<compile_context>
chip_gen: v5e
topology: v5e:2x2
jax: 0.10.0
libtpu: 0.0.40
codegen_flags: <defaults>
</compile_context>

<pallas_src>
import math
import jax
import jax.numpy as jnp
from jax import lax
from jax.experimental import pallas as pl
from jax.experimental.pallas import tpu as pltpu


def head_kernel(x_ref, w_ref, o_ref):
    """Fused single-head causal attention forward for one batch element.

    x_ref: (1, T, C)  f32   activations (one batch element)
    w_ref: (3, C, H)  bf16  stacked [Wq * C**-0.5, Wk, Wv]
    o_ref: (1, T, H)  f32   output
    """
    # In-kernel bf16 cast of activations (VPU; no extra wrapper-side HBM pass).
    x = x_ref[0].astype(jnp.bfloat16)          # (T, C)
    w = w_ref[...]                             # (3, C, H) bf16
    T = x.shape[0]

    # QKV projections: leading-axis weight indexing (free), bf16 MXU, f32 acc.
    q = jnp.dot(x, w[0], preferred_element_type=jnp.float32)  # pre-scaled by C**-0.5
    k = jnp.dot(x, w[1], preferred_element_type=jnp.float32)
    v = jnp.dot(x, w[2], preferred_element_type=jnp.float32).astype(jnp.bfloat16)

    # Attention scores: contract last dims (no explicit transpose), bf16 in / f32 acc.
    scores = jnp.einsum(
        "td,sd->ts",
        q.astype(jnp.bfloat16),
        k.astype(jnp.bfloat16),
        preferred_element_type=jnp.float32,
    )                                          # (T, T)

    # Causal mask: one (T, T) compare built in-kernel (no tril DMA, no B broadcast).
    row = lax.broadcasted_iota(jnp.int32, (T, T), 0)
    col = lax.broadcasted_iota(jnp.int32, (T, T), 1)
    scores = jnp.where(row >= col, scores, -jnp.inf)

    # Numerically stable softmax in f32; reciprocal goes to the otherwise-idle EUP.
    # Rows can never be fully masked (diagonal is kept), so the denominator is >= 1.
    m = jnp.max(scores, axis=-1, keepdims=True)
    e = jnp.exp(scores - m)
    inv = pl.reciprocal(jnp.sum(e, axis=-1, keepdims=True), approx=True)
    wei = (e * inv).astype(jnp.bfloat16)

    # TODO(synk): dropout(p=0.0) is the identity here; stochastic dropout would use pltpu.prng_*.

    # PV matmul: bf16 operands, f32 accumulation, f32 writeback.
    o_ref[0] = jnp.dot(wei, v, preferred_element_type=jnp.float32).astype(o_ref.dtype)


def fuse_head_weights(wq, wk, wv, n_embd):
    """One-time weight prep: fold C**-0.5 into Wq, stack as (3, C, H), cast to bf16.

    Done once at init so no per-call HBM pass re-casts the weights.
    Note: the folded scale (n_embd**-0.5) is modest, so baking it into bf16
    mantissa is safe; a large/small scale should instead be applied in f32
    inside the kernel.
    """
    fused = jnp.stack([wq * (n_embd ** -0.5), wk, wv], axis=0)   # (3, C, H) f32
    return fused.astype(jnp.bfloat16)


def head_forward(x, w_qkv):
    """x: (B, T, C) f32; w_qkv: (3, C, H) bf16 fused weight. Returns (B, T, H) f32."""
    B, T, C = x.shape
    H = w_qkv.shape[-1]
    return pl.pallas_call(
        head_kernel,
        out_shape=jax.ShapeDtypeStruct((B, T, H), jnp.float32),
        grid=(B,),
        in_specs=[
            pl.BlockSpec((1, T, C), lambda b: (b, 0, 0)),   # one batch element per step
            pl.BlockSpec((3, C, H), lambda b: (0, 0, 0)),   # fused weight, resident
        ],
        out_specs=pl.BlockSpec((1, T, H), lambda b: (b, 0, 0)),
        compiler_params=pltpu.CompilerParams(
            dimension_semantics=("parallel",),              # v7x: split batch across 2 TCs
        ),
    )(x, w_qkv)


def reference_forward(x, wq, wk, wv):
    """Pure-JAX f32 reference matching the PyTorch module."""
    B, T, C = x.shape
    q = x @ wq
    k = x @ wk
    v = x @ wv
    wei = jnp.einsum("btd,bsd->bts", q, k) * (C ** -0.5)
    mask = jnp.tril(jnp.ones((T, T), dtype=bool))
    wei = jnp.where(mask[None], wei, -jnp.inf)
    wei = jax.nn.softmax(wei, axis=-1)
    return jnp.einsum("bts,bsd->btd", wei, v)


if __name__ == "__main__":
    # Module-consistent small shapes: batch=2, block_size(T)=8, n_embd=32, head_size=16
    B, T, C, H = 2, 8, 32, 16

    key = jax.random.PRNGKey(0)
    kx, kk, kq, kv = jax.random.split(key, 4)
    x = jax.random.normal(kx, (B, T, C), dtype=jnp.float32)

    # Deterministic "Linear" weights (bias=False), stored as (C, H) == weight.T
    bound = 1.0 / math.sqrt(C)
    wk = jax.random.uniform(kk, (C, H), jnp.float32, -bound, bound)
    wq = jax.random.uniform(kq, (C, H), jnp.float32, -bound, bound)
    wv = jax.random.uniform(kv, (C, H), jnp.float32, -bound, bound)

    # One-time weight prep (done at "init", not per call): scale fold + stack + bf16.
    w_qkv = fuse_head_weights(wq, wk, wv, n_embd=C)

    out = jax.block_until_ready(head_forward(x, w_qkv))
    ref = reference_forward(x, wq, wk, wv)

    assert out.shape == (B, T, H)
    # bf16 MXU operands (f32 accumulation) -> compare loosely against the pure-f32 reference.
    assert jnp.allclose(out, ref, atol=3e-2, rtol=3e-2), "mismatch vs reference"

    print("KERNEL_OK")
</pallas_src>

<mosaic_0001>
module attributes {stable_mosaic.version = 11 : i64} {
  func.func @head_kernel(%arg0: i32, %arg1: memref<1x8x32xf32, #tpu.memory_space<vmem>>, %arg2: memref<3x32x16xbf16, #tpu.memory_space<vmem>>, %arg3: memref<1x8x16xf32, #tpu.memory_space<vmem>>) attributes {dimension_semantics = [#tpu.dimension_semantics<parallel>], iteration_bounds = array<i64: 2>, scalar_prefetch = 0 : i64, scratch_operands = 0 : i64, tpu.core_type = #tpu.core_type<tc>, window_params = [{transform_indices = @transform_0, window_bounds = array<i64: 1, 8, 32>}, {pipeline_mode = #tpu.pipeline_mode<synchronous>, transform_indices = @transform_1, window_bounds = array<i64: 3, 32, 16>}, {transform_indices = @transform_2, window_bounds = array<i64: 1, 8, 16>}]} {
    %c0 = arith.constant 0 : index
    %c0_0 = arith.constant 0 : index
    %c0_1 = arith.constant 0 : index
    %0 = vector.load %arg1[%c0, %c0_0, %c0_1] : memref<1x8x32xf32, #tpu.memory_space<vmem>>, vector<1x8x32xf32>
    %1 = vector.shape_cast %0 : vector<1x8x32xf32> to vector<8x32xf32>
    %2 = arith.truncf %1 : vector<8x32xf32> to vector<8x32xbf16>
    %c0_2 = arith.constant 0 : index
    %c0_3 = arith.constant 0 : index
    %c0_4 = arith.constant 0 : index
    %3 = vector.load %arg2[%c0_2, %c0_3, %c0_4] : memref<3x32x16xbf16, #tpu.memory_space<vmem>>, vector<3x32x16xbf16>
    %4 = vector.extract_strided_slice %3 {offsets = [0, 0, 0], sizes = [1, 32, 16], strides = [1, 1, 1]} : vector<3x32x16xbf16> to vector<1x32x16xbf16>
    %5 = vector.shape_cast %4 : vector<1x32x16xbf16> to vector<32x16xbf16>
    %cst = arith.constant dense<0.000000e+00> : vector<8x16xf32>
    %6 = tpu.matmul %2, %5, %cst {dimension_numbers = #tpu.dot_dimension_numbers<[1], [0], [0], [1], [0, 0, 1, 1], [], []>} : vector<8x32xbf16>, vector<32x16xbf16>, vector<8x16xf32> -> vector<8x16xf32>
    %7 = vector.extract_strided_slice %3 {offsets = [1, 0, 0], sizes = [1, 32, 16], strides = [1, 1, 1]} : vector<3x32x16xbf16> to vector<1x32x16xbf16>
    %8 = vector.shape_cast %7 : vector<1x32x16xbf16> to vector<32x16xbf16>
    %cst_5 = arith.constant dense<0.000000e+00> : vector<8x16xf32>
    %9 = tpu.matmul %2, %8, %cst_5 {dimension_numbers = #tpu.dot_dimension_numbers<[1], [0], [0], [1], [0, 0, 1, 1], [], []>} : vector<8x32xbf16>, vector<32x16xbf16>, vector<8x16xf32> -> vector<8x16xf32>
    %10 = vector.extract_strided_slice %3 {offsets = [2, 0, 0], sizes = [1, 32, 16], strides = [1, 1, 1]} : vector<3x32x16xbf16> to vector<1x32x16xbf16>
    %11 = vector.shape_cast %10 : vector<1x32x16xbf16> to vector<32x16xbf16>
    %cst_6 = arith.constant dense<0.000000e+00> : vector<8x16xf32>
    %12 = tpu.matmul %2, %11, %cst_6 {dimension_numbers = #tpu.dot_dimension_numbers<[1], [0], [0], [1], [0, 0, 1, 1], [], []>} : vector<8x32xbf16>, vector<32x16xbf16>, vector<8x16xf32> -> vector<8x16xf32>
    %13 = arith.truncf %12 : vector<8x16xf32> to vector<8x16xbf16>
    %14 = arith.truncf %6 : vector<8x16xf32> to vector<8x16xbf16>
    %15 = arith.truncf %9 : vector<8x16xf32> to vector<8x16xbf16>
    "tpu.trace_start"() <{level = 10 : i32, message = "td,sd->ts"}> : () -> ()
    %cst_7 = arith.constant dense<0.000000e+00> : vector<8x8xf32>
    %16 = tpu.matmul %14, %15, %cst_7 {dimension_numbers = #tpu.dot_dimension_numbers<[1], [1], [0], [0], [0, 0, 1, 0], [], []>} : vector<8x16xbf16>, vector<8x16xbf16>, vector<8x8xf32> -> vector<8x8xf32>
    "tpu.trace_stop"() : () -> ()
    %17 = tpu.iota {dimensions = array<i32: 0>} : vector<8x8xi32>
    %18 = tpu.iota {dimensions = array<i32: 1>} : vector<8x8xi32>
    %19 = arith.cmpi sge, %17, %18 : vector<8x8xi32>
    %cst_8 = arith.constant 0xFF800000 : f32
    %20 = vector.broadcast %cst_8 : f32 to vector<8x8xf32>
    %21 = arith.select %19, %16, %20 : vector<8x8xi1>, vector<8x8xf32>
    %cst_9 = arith.constant dense<0xFF800000> : vector<8xf32>
    %22 = vector.multi_reduction <maximumf>, %21, %cst_9 [1] : vector<8x8xf32> to vector<8xf32>
    %23 = vector.shape_cast %22 : vector<8xf32> to vector<8x1xf32>
    %24 = vector.broadcast %23 : vector<8x1xf32> to vector<8x8xf32>
    %25 = arith.subf %21, %24 : vector<8x8xf32>
    %26 = math.exp %25 : vector<8x8xf32>
    %cst_10 = arith.constant dense<0.000000e+00> : vector<8xf32>
    %27 = vector.multi_reduction <add>, %26, %cst_10 [1] : vector<8x8xf32> to vector<8xf32>
    %28 = vector.shape_cast %27 : vector<8xf32> to vector<8x1xf32>
    %29 = tpu.reciprocal %28 {approx = true} : vector<8x1xf32> -> vector<8x1xf32>
    %30 = vector.broadcast %29 : vector<8x1xf32> to vector<8x8xf32>
    %31 = arith.mulf %26, %30 : vector<8x8xf32>
    %32 = arith.truncf %31 : vector<8x8xf32> to vector<8x8xbf16>
    %cst_11 = arith.constant dense<0.000000e+00> : vector<8x16xf32>
    %33 = tpu.matmul %32, %13, %cst_11 {dimension_numbers = #tpu.dot_dimension_numbers<[1], [0], [0], [1], [0, 0, 1, 1], [], []>} : vector<8x8xbf16>, vector<8x16xbf16>, vector<8x16xf32> -> vector<8x16xf32>
    %c0_12 = arith.constant 0 : index
    %c0_13 = arith.constant 0 : index
    %c0_14 = arith.constant 0 : index
    %34 = vector.load %arg3[%c0_12, %c0_13, %c0_14] : memref<1x8x16xf32, #tpu.memory_space<vmem>>, vector<1x8x16xf32>
    %35 = vector.shape_cast %34 : vector<1x8x16xf32> to vector<8x16xf32>
    %36 = vector.shape_cast %33 : vector<8x16xf32> to vector<1x8x16xf32>
    tpu.vector_store %arg3[%c0_12, %c0_13, %c0_14], %36 {strides = array<i32>} : memref<1x8x16xf32, #tpu.memory_space<vmem>>, vector<1x8x16xf32>,
    return
  }
  func.func @transform_0(%arg0: i32) -> (i32, i32, i32) {
    %c0_i32 = arith.constant 0 : i32
    %c0_i32_0 = arith.constant 0 : i32
    %c0_i32_1 = arith.constant 0 : i32
    return %arg0, %c0_i32, %c0_i32_0 : i32, i32, i32
  }
  func.func @transform_1(%arg0: i32) -> (i32, i32, i32) {
    %c0_i32 = arith.constant 0 : i32
    %c0_i32_0 = arith.constant 0 : i32
    %c0_i32_1 = arith.constant 0 : i32
    %c0_i32_2 = arith.constant 0 : i32
    return %c0_i32, %c0_i32_0, %c0_i32_1 : i32, i32, i32
  }
  func.func @transform_2(%arg0: i32) -> (i32, i32, i32) {
    %c0_i32 = arith.constant 0 : i32
    %c0_i32_0 = arith.constant 0 : i32
    %c0_i32_1 = arith.constant 0 : i32
    return %arg0, %c0_i32, %c0_i32_0 : i32, i32, i32
  }
}

</mosaic_0001>

<bundles_post_ra>
// kernel: tpu_custom_call.1
= control target key start
LH: loop header
LB: loop body
LE: loop exit
PB: predicated region body
PF: predicated region fallthrough
CT: control target
= control target key end

     0   :  { %7 = vsyncpa [#allocation3], 0  ;;  %s650_s0 = inlined_call_operand.vmem [shape: f32[2,8,32], index: 0, kind: input, shape index: {}]   ;;  %s651_s1 = inlined_call_operand.vmem [shape: bf16[3,32,16], index: 1, kind: input, shape index: {}]   ;;  %s652_s2 = inlined_call_operand.hbm [shape: f32[2,8,16], index: 2, kind: output, shape index: {}]  }
   0x1   :  { %9 = vsyncpa [#allocation3 + $0x1], 0  ;;  %s538_s9 = smov 0   ;;  %s540_s10 = smov 0  }
   0x2   :  { %s542_s11 = smov 0   ;;  %s544_s12 = smov 0  }
   0x3 LB: > { %s559_s13 = sadd.s32 4294967295, %s521_s12   ;;  %s371_s14 = sadd.s32 4294967294, %s521_s12   ;;  %s521_s12 = sphi %s544_s12, %s658_s12   ;;  %s517_s11 = sphi %s542_s11, %s657_s11   ;;  %s513_s10 = sphi %s540_s10, %s656_s10   ;;  %s509_s9 = sphi %s538_s9, %s655_s9  }
   0x4   : > { %s563_s15 = sadd.s32 1, %s521_s12   ;;  %s69_s16 = sadd.s32 1, %s517_s11 }
   0x5   : > { %s66_s17 = ssub.s32 %s521_s12, %s563_s15  ;;  %p79_p0 = scmp.ne.s32.totalorder %s517_s11, %s513_s10 }
   0x6   : > { %p67_p1 = scmp.eq.s32.totalorder %s66_s17, 0  ;;  %p80_p2 = scmp.eq.s32.totalorder %s559_s13, 1 }
   0x7   : > { %p85_p3 = scmp.ne.s32.totalorder %s513_s10, %s509_s9  ;;  %p86_p4 = scmp.eq.s32.totalorder %s371_s14, 1 }
   0x8   : > { %s574_s18 = scalar_select %p67_p1, %s517_s11, %s69_s16  }
   0x9   : > { %p576_p5 = por %p80_p2, %p79_p0  ;;  %p580_p6 = por %p86_p4, %p85_p3 }
   0xa   : > { %p374_p7 = scmp.ge.s32.totalorder %s521_s12, 1  ;;  %p114_p8 = scmp.lt.s32.totalorder %s521_s12, 3 }
   0xc   : > { %p115_p9 = pnand %p374_p7, %p114_p8 }
   0xd   : > { %p135_p10 = scmp.lt.s32.totalorder (!%p115_p9), %s559_s13, 1  ;;  %s132_s16 = sand.u32 (!%p115_p9), 1, %s513_s10  }
   0xe   : > { %118 = sbr.rel (%p115_p9) target bundleno = 686 (0x2ae), region = 28  ;;  %s407_s17 = sshll.u32 (!%p115_p9), %s559_s13, 3 }
   0xf   : > { %s375_s21 = sshll.u32 (!%p115_p9), %s132_s16, 3  ;;  %s307_s24 = scalar_lea.hbm (!%p115_p9), %s652_s2, %s407_s17 }
  0x10   : > { %s134_s25 = scalar_lea.vmem (!%p115_p9), [#allocation2], %s375_s21  ;;  %s311_s27 = sshll.u32 (!%p115_p9), %s307_s24, 4  ;;  %s312_s27 = int_to_ptr.hbm [resolvable:$true] %s311_s27 }
  0x11   : > { %s309_s26 = sshll.u32 (!%p115_p9), %s134_s25, 4  ;;  %s297_s28 = scalar_lea.sflag (!%p115_p9), [#allocation3], %s132_s16  ;;  %s310_s26 = int_to_ptr.vmem [resolvable:$true] %s309_s26 }
  0x12   : > { %s479_s4 = scalar_lea.hbm (!%p115_p9), %s652_s2, 16 }
  0x13   : > { %v411_v0 = vld [vmem:[%s651_s1 + $0x8] sm:$0xff]  ;;  %v413_v1 = vld [vmem:[%s651_s1 + $0x18] sm:$0xff]  ;;  %v410_v2 = vld [vmem:[%s651_s1] sm:$0xff]  ;;  %s136_s29 = scalar_select %p135_p10, %s559_s13, 1  ;;  %vm166_vm0 = vcmask 261120   ;;  %vm236_vm1 = vcmask 130048   ;;  %v256_v15 = vlaneseq }
  0x14   : > { %176 = vmatpush.bf16.msra.mxu0 %v411_v0  ;;  %201 = vmatpush.bf16.msra.mxu1 %v413_v1  ;;  %v412_v3 = vld [vmem:[%s651_s1 + $0x10] sm:$0xff]  ;;  %v415_v13 = vld [vmem:[%s651_s1 + $0x28] sm:$0xff]  ;;  %v414_v14 = vld [vmem:[%s651_s1 + $0x20] sm:$0xff]  ;;  %vm262_vm3 = vcmask 64512   ;;  %vm278_vm4 = vcmask 1043456  }
  0x15   : > { %s376_s30 = sshll.u32 %s136_s29, 3  ;;  %226 = vmatpush.bf16.msra.mxu2 %v415_v13  ;;  %v257_v16 = vshrl.u32 %v256_v15, 7  ;;  %v259_v17 = vand.u32 127, %v256_v15  ;;  %s473_s29 = sshra.s32 %s312_s27, 4  ;;  %s474_s29 = int_to_ptr.hbm [resolvable:$true] %s473_s29 }
  0x16   : > { %s138_s5 = scalar_lea.vmem %s650_s0, %s376_s30  ;;  %s475_s30 = scalar_lea.hbm %s474_s29, 8 }
  0x17   : > { %v140_v4 = vld [vmem:[%s138_s5] sm:$0xff]  ;;  %vm260_vm2 = vcmp.ge.s32.totalorder %v257_v16, %v259_v17  ;;  %p476_p11 = scmp.ne.s32.totalorder %s474_s29, %s475_s30  ;;  %p480_p0 = scmp.lt.s32.totalorder %s474_s29, %s652_s2 }
  0x18   : > { %177 = vmatpush.bf16.msra.mxu0 %v410_v2  ;;  %202 = vmatpush.bf16.msra.mxu1 %v412_v3  ;;  %v141_v5 = vpack.c.bf16 %v140_v4, %v140_v4  ;;  %p481_p1 = scmp.lt.s32.totalorder %s479_s4, %s475_s30 }
  0x19   : > { %227 = vmatpush.bf16.msra.mxu2 %v414_v14  ;;  %p477_p12 = pnand %p476_p11, %p576_p5 }
  0x1a   : > { %p482_p2 = por %p481_p1, %p480_p0 }
  0x1b   : > { %385 = vmatmul.msk.bf16.vlgmr.msra.gmra.mxu0 %vm166_vm0, %v141_v5  ;;  %394 = vmatmul.msk.bf16.vlgmr.msra.gmra.mxu1 %vm166_vm0, %v141_v5  ;;  %p478_p13 = pneg %p477_p12 }
  0x1c   : > { %403 = vmatmul.msk.bf16.vlgmr.msra.gmra.mxu2 %vm166_vm0, %v141_v5 }
  0x1d   : > { %p483_p3 = pnand %p482_p2, %p478_p13 }
  0x98   : > { %v179_v6 = vpop.f32.mrf.mxu0  ;;  %v204_v7 = vpop.f32.mrf.mxu1 }
  0x99   : > { %v235_v8 = vpack.c.bf16 %v204_v7, %v204_v7  ;;  %v234_v10 = vpack.c.bf16 %v179_v6, %v179_v6 }
  0x9b   : > { %v241_v9 = vsel %vm236_vm1, %v235_v8, 0 }
  0x9c   : > { %250 = vmatpush.bf16.xpose.msra.mxu3 %v241_v9 }
  0x9f   : > { %v229_v22 = vpop.f32.mrf.mxu2 }
  0xa0   : > { %v181_v11 = vpop.f32.mrf.mxu0  ;;  %v206_v12 = vpop.f32.mrf.mxu1  ;;  %v233_v23 = vpack.c.bf16 %v229_v22, %v229_v22 }
  0xa2   : > { %v280_v26 = vsel %vm278_vm4, %v233_v23, 0 }
  0xa3   : > { %404 = vmatmul.msk.bf16.vlgmr.msra.gmra.mxu3 %vm236_vm1, %v234_v10  ;;  %289 = vmatpush.bf16.msrb.mxu0 %v280_v26 }
  0xa7   : > { %v231_v28 = vpop.f32.mrf.mxu2 }
 0x126   : > { %v252_v18 = vpop.f32.mrf.mxu3 }
 0x127   : > { %v261_v19 = vsel %vm260_vm2, %v252_v18, -inf }
 0x128   : > { %v263_v20 = vsel %vm262_vm3, %v261_v19, -inf }
 0x129   : > { %264 = vmax.xlane.f32.xlu0 %v263_v20 }
 0x12e   : > { %v254_v21 = vpop.f32.mrf.mxu3 }
 0x19c   : > { %v265_v24 = vpop.xlane.xlu0 %264 }
 0x19d   : > { %v266_v25 = vsub.f32 %v261_v19, %v265_v24 }
 0x19f   : > { %v267_v27 = vmul.f32 1.442695, %v266_v25 }
 0x1a1   : > { %455 = vpow2.f32 %v267_v27 }
 0x1a7   : > { %v456_v29 = vpop.eup %455 }
 0x1a8   : > { %v269_v30 = vsel %vm262_vm3, %v456_v29, 0.0 }
 0x1a9   : > { %270 = vadd.xlane.f32.xlu0 %v269_v30 }
 0x21c   : > { %v271_v31 = vpop.xlane.xlu0 %270 }
 0x21d   : > { %457 = vrcp.f32 %v271_v31 }
 0x223   : > { %v458_v32 = vpop.eup %457 }
 0x224   : > { %v273_v33 = vmul.f32 %v458_v32, %v456_v29 }
 0x226   : > { %v274_v34 = vpack.c.bf16 %v273_v33, %v273_v33 }
 0x228   : > { %405 = vmatmul.msk.bf16.vlgmr.msrb.gmra.mxu0 %vm262_vm3, %v274_v34 }
 0x2a5   : > { %v291_v35 = vpop.f32.mrf.mxu0 }
 0x2a6   : > { %295 = vst.msk [vmem:[%s134_s25] sm:$0xff] %vm236_vm1, %v291_v35 }
 0x2a7   : > { %486 = shalt.err (!%p483_p3)
}
 0x2a8   : > { %416 = dma.vmem_to_hbm [thread:$0]  (%p576_p5), %s310_s26, 128, %s312_s27, %s297_s28  }
 0x2ad   : > { %v293_v36 = vpop.f32.mrf.mxu0 }
 0x2ae PF: > { %p422_p4 = scmp.ge.s32.totalorder %s521_s12, 2  ;;  %s323_s7 = sand.u32 1, %s509_s9  }
 0x2af   : > { %s324_s8 = scalar_lea.sflag [#allocation3], %s323_s7 }
 0x2b0   : > { %p419_p7 = pnand %p422_p4, %p580_p6 }
 0x2b2   : > { %p420_p8 = pneg %p419_p7 }
 0x2b4   : > { %504 = dma.done.wait (%p420_p8), %s324_s8, 128  }
 0x2b5   : > { %506 = vsyncadd (%p420_p8), %s324_s8, 4294967168  ;;  %p12_p9 = scmp.ge.s32.totalorder %s563_s15, 4   ;;  %s655_s9 = smov %s513_s10 }
 0x2b6   : > { %s656_s10 = smov %s517_s11  ;;  %s657_s11 = smov %s574_s18 }
 0x2b7   : > { %s658_s12 = smov %s563_s15  ;;  %14 = sbr.rel (!%p12_p9) target bundleno = 3 (0x3), region = 63 }
 0x2bc   :  { %330 = vsyncpa [#allocation3], 1 }
 0x2bd   :  { %332 = vsyncpa [#allocation3 + $0x1], 1 }

</bundles_post_ra>
